<compile_context>
chip_gen: v7x
topology: tpu7x:2x2x1
jax: 0.10.0
libtpu: 0.0.40
codegen_flags: <defaults>
</compile_context>

<pallas_src>
import functools

import jax
import jax.numpy as jnp
from jax import lax
from jax.experimental import pallas as pl
from jax.experimental.pallas import tpu as pltpu


def _round_up(a, b):
    return (a + b - 1) // b * b


def _nt_xent_kernel(x_ref, out_ref, *, tau, normalize, n, m, tm):
    """One grid step: query rows [i*tm, (i+1)*tm) of padded x vs. ALL rows.

    x_ref  : (mp, dp) f32; rows 0..2N-1 = cat(xi, xj), remainder zero padding.
    out_ref: (1, 1, 128) f32; this tile's partial sum of per-row loss terms,
             broadcast across 128 lanes (lane-dense store).
    """
    i = pl.program_id(0)
    mp, dp = x_ref.shape

    xk = x_ref[...]                                   # all key rows (VMEM resident)
    row0 = pl.multiple_of(i * tm, tm)
    xq = x_ref[pl.ds(row0, tm), :]                    # this step's query rows

    inv_tau = jnp.float32(1.0 / tau)

    if normalize:
        # cosine similarity == dot product of row-normalized vectors
        # (equivalent to sim / clamp(|x_i| * |x_j|, 1e-16) for nonzero rows).
        xq = xq * lax.rsqrt(jnp.maximum(jnp.sum(xq * xq, -1, keepdims=True), 1e-30))
        xk = xk * lax.rsqrt(jnp.maximum(jnp.sum(xk * xk, -1, keepdims=True), 1e-30))

    # s[r, c] = <x_r, x_c> / tau    (MXU: A @ B^T via contraction on last dims)
    s = lax.dot_general(xq, xk, (((1,), (1,)), ((), ())),
                        preferred_element_type=jnp.float32) * inv_tau   # (tm, mp)

    row_ids = i * tm + lax.broadcasted_iota(jnp.int32, (tm, 1), 0)      # global row id
    col_ids = lax.broadcasted_iota(jnp.int32, (tm, mp), 1)              # global col id

    # denominator: sum of exp(s) over the 2N real columns, minus exp(1/tau)
    e = jnp.where(col_ids < m, jnp.exp(s), 0.0)
    denom = jnp.sum(e, axis=-1, keepdims=True) - jnp.exp(inv_tau)       # (tm, 1)

    # positive pair of global row r is row (r + n) mod 2n -> pick s[r, partner]
    partner = jnp.where(row_ids < n, row_ids + n, row_ids - n)          # (tm, 1)
    pos = jnp.sum(jnp.where(col_ids == partner, s, 0.0), -1, keepdims=True)
    sim_match = jnp.exp(pos)

    term = -jnp.log(sim_match / denom)                                  # (tm, 1)
    term = jnp.where(row_ids < m, term, 0.0)                            # drop padded rows

    out_ref[...] = jnp.full((1, 1, 128), jnp.sum(term), dtype=jnp.float32)


def contrastive_loss_tpu(xi, xj, tau=0.1, normalize=False, row_tile=128):
    """Pallas-fused forward of contrastive_loss(tau, normalize)(xi, xj)."""
    assert xi.shape == xj.shape and xi.ndim == 2
    n, d = xi.shape
    m = 2 * n

    # Glue (pure layout): concat the two views, zero-pad rows to a multiple of
    # the 128-row MXU tile and features to a multiple of 128 lanes.
    x = jnp.concatenate([xi, xj], axis=0).astype(jnp.float32)
    dp = _round_up(d, 128)
    mp = _round_up(m, row_tile)
    g = mp // row_tile
    xp = jnp.zeros((mp, dp), jnp.float32).at[:m, :d].set(x)

    kernel = functools.partial(
        _nt_xent_kernel, tau=float(tau), normalize=bool(normalize),
        n=n, m=m, tm=row_tile)

    partials = pl.pallas_call(
        kernel,
        out_shape=jax.ShapeDtypeStruct((g, 1, 128), jnp.float32),
        grid=(g,),
        # x stays VMEM-resident across all row tiles (same block every step).
        in_specs=[pl.BlockSpec((mp, dp), lambda i: (0, 0))],
        # lane-dense per-tile partial sums; steps independent -> parallel axis.
        out_specs=pl.BlockSpec((1, 1, 128), lambda i: (i, 0, 0)),
        compiler_params=pltpu.CompilerParams(
            dimension_semantics=("parallel",)),
    )(xp)

    # tiny final reduction over per-tile partials in glue
    return jnp.sum(partials[:, 0, 0]) / m


def _reference_loss(xi, xj, tau, normalize):
    """Literal jnp transcription of the PyTorch forward, for validation."""
    x = jnp.concatenate([xi, xj], axis=0)
    sim = x @ x.T
    if normalize:
        nrm = jnp.linalg.norm(x, axis=1)
        sim = sim / jnp.maximum(nrm[:, None] * nrm[None, :], 1e-16)
    sim = jnp.exp(sim / tau)
    if normalize:
        dnm = jnp.linalg.norm(xi, axis=1) * jnp.linalg.norm(xj, axis=1)
        match = jnp.exp(jnp.sum(xi * xj, -1) / dnm / tau)
    else:
        match = jnp.exp(jnp.sum(xi * xj, -1) / tau)
    match = jnp.concatenate([match, match], axis=0)
    norm_sum = jnp.exp(jnp.ones(x.shape[0]) / tau)
    return jnp.mean(-jnp.log(match / (jnp.sum(sim, -1) - norm_sum)))


if __name__ == "__main__":
    key = jax.random.PRNGKey(0)
    ks = jax.random.split(key, 4)

    def unit_rows(v):
        return v / jnp.linalg.norm(v, axis=1, keepdims=True)

    # tau chosen so the reference's (row_sum - exp(1/tau)) denominator stays
    # positive for unit-norm embeddings (the literal formula NaNs otherwise).
    tau = 0.5

    # config 1: small shapes (single 128-row tile, grid=(1,))
    N, D = 8, 32
    xi = unit_rows(jax.random.normal(ks[0], (N, D), jnp.float32))
    xj = unit_rows(jax.random.normal(ks[1], (N, D), jnp.float32))

    # config 2: exercises the multi-tile grid (G=3) plus row/column masking
    N2, D2 = 144, 48
    xi2 = unit_rows(jax.random.normal(ks[2], (N2, D2), jnp.float32))
    xj2 = unit_rows(jax.random.normal(ks[3], (N2, D2), jnp.float32))

    for a, b in ((xi, xj), (xi2, xj2)):
        for normalize in (False, True):
            fn = jax.jit(functools.partial(contrastive_loss_tpu, tau=tau,
                                           normalize=normalize))
            loss = fn(a, b)
            jax.block_until_ready(loss)
            ref = _reference_loss(a, b, tau, normalize)
            assert loss.shape == (), loss.shape
            assert bool(jnp.isfinite(loss)), loss
            err = abs(float(loss) - float(ref))
            assert err < 2e-3 * max(1.0, abs(float(ref))), (float(loss), float(ref))

    print("KERNEL_OK")
</pallas_src>

<mosaic_0001>
module attributes {stable_mosaic.version = 11 : i64} {
  func.func @_nt_xent_kernel(%arg0: i32, %arg1: memref<128x128xf32, #tpu.memory_space<vmem>>, %arg2: memref<1x1x128xf32, #tpu.memory_space<vmem>>) attributes {dimension_semantics = [#tpu.dimension_semantics<parallel>], iteration_bounds = array<i64: 1>, scalar_prefetch = 0 : i64, scratch_operands = 0 : i64, tpu.core_type = #tpu.core_type<tc>, window_params = [{pipeline_mode = #tpu.pipeline_mode<synchronous>, transform_indices = @transform_0, window_bounds = array<i64: 128, 128>}, {transform_indices = @transform_1, window_bounds = array<i64: 1, 1, 128>}]} {
    %c0 = arith.constant 0 : index
    %c0_0 = arith.constant 0 : index
    %0 = vector.load %arg1[%c0, %c0_0] : memref<128x128xf32, #tpu.memory_space<vmem>>, vector<128x128xf32>
    %c128_i32 = arith.constant 128 : i32
    %1 = arith.muli %arg0, %c128_i32 : i32
    %2 = tpu.assume_multiple %1, 128 : i32
    %3 = arith.index_cast %2 : i32 to index
    %c0_1 = arith.constant 0 : index
    %4 = vector.load %arg1[%3, %c0_1] : memref<128x128xf32, #tpu.memory_space<vmem>>, vector<128x128xf32>
    %cst = arith.constant dense<0.000000e+00> : vector<128x128xf32>
    %5 = tpu.matmul %4, %0, %cst {dimension_numbers = #tpu.dot_dimension_numbers<[1], [1], [0], [0], [0, 0, 1, 0], [], []>} : vector<128x128xf32>, vector<128x128xf32>, vector<128x128xf32> -> vector<128x128xf32>
    %cst_2 = arith.constant 2.000000e+00 : f32
    %6 = vector.broadcast %cst_2 : f32 to vector<128x128xf32>
    %7 = arith.mulf %5, %6 : vector<128x128xf32>
    %c128_i32_3 = arith.constant 128 : i32
    %8 = arith.muli %arg0, %c128_i32_3 : i32
    %9 = tpu.iota {dimensions = array<i32: 0>} : vector<128x1xi32>
    %10 = vector.broadcast %8 : i32 to vector<128x1xi32>
    %11 = arith.addi %10, %9 : vector<128x1xi32>
    %12 = tpu.iota {dimensions = array<i32: 1>} : vector<128x128xi32>
    %c16_i32 = arith.constant 16 : i32
    %13 = vector.broadcast %c16_i32 : i32 to vector<128x128xi32>
    %14 = arith.cmpi slt, %12, %13 : vector<128x128xi32>
    %15 = math.exp %7 : vector<128x128xf32>
    %cst_4 = arith.constant 0.000000e+00 : f32
    %16 = vector.broadcast %cst_4 : f32 to vector<128x128xf32>
    %17 = arith.select %14, %15, %16 : vector<128x128xi1>, vector<128x128xf32>
    %cst_5 = arith.constant dense<0.000000e+00> : vector<128xf32>
    %18 = vector.multi_reduction <add>, %17, %cst_5 [1] : vector<128x128xf32> to vector<128xf32>
    %19 = vector.shape_cast %18 : vector<128xf32> to vector<128x1xf32>
    %cst_6 = arith.constant 2.000000e+00 : f32
    %20 = math.exp %cst_6 : f32
    %21 = vector.broadcast %20 : f32 to vector<128x1xf32>
    %22 = arith.subf %19, %21 : vector<128x1xf32>
    %c8_i32 = arith.constant 8 : i32
    %23 = vector.broadcast %c8_i32 : i32 to vector<128x1xi32>
    %24 = arith.cmpi slt, %11, %23 : vector<128x1xi32>
    %c8_i32_7 = arith.constant 8 : i32
    %25 = vector.broadcast %c8_i32_7 : i32 to vector<128x1xi32>
    %26 = arith.addi %11, %25 : vector<128x1xi32>
    %c8_i32_8 = arith.constant 8 : i32
    %27 = vector.broadcast %c8_i32_8 : i32 to vector<128x1xi32>
    %28 = arith.subi %11, %27 : vector<128x1xi32>
    %29 = arith.select %24, %26, %28 : vector<128x1xi1>, vector<128x1xi32>
    %30 = vector.broadcast %29 : vector<128x1xi32> to vector<128x128xi32>
    %31 = arith.cmpi eq, %12, %30 : vector<128x128xi32>
    %cst_9 = arith.constant 0.000000e+00 : f32
    %32 = vector.broadcast %cst_9 : f32 to vector<128x128xf32>
    %33 = arith.select %31, %7, %32 : vector<128x128xi1>, vector<128x128xf32>
    %cst_10 = arith.constant dense<0.000000e+00> : vector<128xf32>
    %34 = vector.multi_reduction <add>, %33, %cst_10 [1] : vector<128x128xf32> to vector<128xf32>
    %35 = vector.shape_cast %34 : vector<128xf32> to vector<128x1xf32>
    %36 = math.exp %35 : vector<128x1xf32>
    %37 = arith.divf %36, %22 : vector<128x1xf32>
    %38 = math.log %37 : vector<128x1xf32>
    %cst_11 = arith.constant 0.000000e+00 : f32
    %39 = vector.broadcast %cst_11 : f32 to vector<128x1xf32>
    %40 = arith.subf %39, %38 : vector<128x1xf32>
    %c16_i32_12 = arith.constant 16 : i32
    %41 = vector.broadcast %c16_i32_12 : i32 to vector<128x1xi32>
    %42 = arith.cmpi slt, %11, %41 : vector<128x1xi32>
    %cst_13 = arith.constant 0.000000e+00 : f32
    %43 = vector.broadcast %cst_13 : f32 to vector<128x1xf32>
    %44 = arith.select %42, %40, %43 : vector<128x1xi1>, vector<128x1xf32>
    %45 = vector.shape_cast %44 : vector<128x1xf32> to vector<1x128x1xf32>
    %cst_14 = arith.constant dense<0.000000e+00> : vector<1xf32>
    %46 = vector.multi_reduction <add>, %45, %cst_14 [1, 2] : vector<1x128x1xf32> to vector<1xf32>
    %47 = vector.shape_cast %46 : vector<1xf32> to vector<1x1x1xf32>
    %48 = vector.extract %47[0, 0, 0] : f32 from vector<1x1x1xf32>
    %49 = vector.broadcast %48 : f32 to vector<1x1x128xf32>
    %c0_15 = arith.constant 0 : index
    %c0_16 = arith.constant 0 : index
    %c0_17 = arith.constant 0 : index
    %50 = vector.load %arg2[%c0_15, %c0_16, %c0_17] : memref<1x1x128xf32, #tpu.memory_space<vmem>>, vector<1x1x128xf32>
    tpu.vector_store %arg2[%c0_15, %c0_16, %c0_17], %49 {strides = array<i32>} : memref<1x1x128xf32, #tpu.memory_space<vmem>>, vector<1x1x128xf32>,
    return
  }
  func.func @transform_0(%arg0: i32) -> (i32, i32) {
    %c0_i32 = arith.constant 0 : i32
    %c0_i32_0 = arith.constant 0 : i32
    %c0_i32_1 = arith.constant 0 : i32
    return %c0_i32, %c0_i32_0 : i32, i32
  }
  func.func @transform_1(%arg0: i32) -> (i32, i32, i32) {
    %c0_i32 = arith.constant 0 : i32
    %c0_i32_0 = arith.constant 0 : i32
    %c0_i32_1 = arith.constant 0 : i32
    return %arg0, %c0_i32, %c0_i32_0 : i32, i32, i32
  }
}

</mosaic_0001>

<bundles_post_ra>
// kernel: contrastive_loss_tpu.1
= control target key start
LH: loop header
LB: loop body
LE: loop exit
PB: predicated region body
PF: predicated region fallthrough
CT: control target
= control target key end

     0   :  { %v203_v24 = vlaneseq  ;;  %vm608_vm3 = vcmask 7168   ;;  %s902_s0 = inlined_call_operand.vmem [shape: f32[128,128], index: 0, kind: input, shape index: {}]   ;;  %s903_s1 = inlined_call_operand.vmem [shape: f32[1,1,128], index: 1, kind: output, shape index: {}]  }
   0x1   :  { %v8_v0 = vld [vmem:[%s902_s0] sm:$0xff]  ;;  %v9_v1 = vld [vmem:[%s902_s0 + $0x8] sm:$0xff]  ;;  %v10_v2 = vld [vmem:[%s902_s0 + $0x10] sm:$0xff] }
   0x2   :  { %v775_v3 = vpack.c.bf16 %v9_v1, %v8_v0  ;;  %v11_v4 = vld [vmem:[%s902_s0 + $0x18] sm:$0xff]  ;;  %751 = vmatprep.mubr.f32.mxu0 %v8_v0  ;;  %v16_v6 = vld [vmem:[%s902_s0 + $0x40] sm:$0xff]  ;;  %v13_v8 = vld [vmem:[%s902_s0 + $0x28] sm:$0xff]  ;;  %v204_v25 = vshrl.u32 %v203_v24, 7  ;;  %v238_v27 = vand.u32 127, %v203_v24 }
   0x3   :  { %v779_v5 = vpack.c.bf16 %v11_v4, %v10_v2  ;;  %v12_v7 = vld [vmem:[%s902_s0 + $0x20] sm:$0xff]  ;;  %763 = vmatprep.mubr.f32.mxu1 %v16_v6  ;;  %v14_v10 = vld [vmem:[%s902_s0 + $0x30] sm:$0xff]  ;;  %v15_v11 = vld [vmem:[%s902_s0 + $0x38] sm:$0xff] }
   0x4   :  { %776 = vmatprep.subr.bf16.mxu0 %v775_v3  ;;  %807 = vmatprep.subr.bf16.mxu1 %v775_v3  ;;  %v783_v9 = vpack.c.bf16 %v13_v8, %v12_v7  ;;  %v787_v12 = vpack.c.bf16 %v15_v11, %v14_v10  ;;  %v17_v13 = vld [vmem:[%s902_s0 + $0x48] sm:$0xff]  ;;  %v18_v15 = vld [vmem:[%s902_s0 + $0x50] sm:$0xff]  ;;  %v19_v16 = vld [vmem:[%s902_s0 + $0x58] sm:$0xff]  ;;  %v205_v26 = vadd.s32 8, %v204_v25  ;;  %vm239_vm2 = vcmp.lt.s32.totalorder %v238_v27, 16 }
   0x5   :  { %778 = vmatpush3.bf16.xpose.msra.mxu0 %v775_v3  ;;  %815 = vmatpush3.bf16.xpose.msra.mxu1 %v775_v3  ;;  %v791_v14 = vpack.c.bf16 %v17_v13, %v16_v6  ;;  %v795_v17 = vpack.c.bf16 %v19_v16, %v18_v15  ;;  %v20_v18 = vld [vmem:[%s902_s0 + $0x60] sm:$0xff]  ;;  %v21_v19 = vld [vmem:[%s902_s0 + $0x68] sm:$0xff]  ;;  %v22_v21 = vld [vmem:[%s902_s0 + $0x70] sm:$0xff] }
   0x6   :  { %780 = vmatprep.subr.bf16.mxu0 %v779_v5  ;;  %808 = vmatprep.subr.bf16.mxu1 %v779_v5  ;;  %v799_v20 = vpack.c.bf16 %v21_v19, %v20_v18  ;;  %v23_v22 = vld [vmem:[%s902_s0 + $0x78] sm:$0xff]  ;;  %vm400_vm0 = vcmp.eq.s32.totalorder %v238_v27, %v205_v26  ;;  %v672_v32 = vadd.s32 4294967288, %v205_v26 }
   0x7   :  { %v803_v23 = vpack.c.bf16 %v23_v22, %v22_v21 }
   0x8   :  { %vm401_vm1 = vcmp.eq.s32.totalorder %v238_v27, %v672_v32 }
   0xd   :  { %782 = vmatpush3.bf16.xpose.msra.mxu0 %v779_v5  ;;  %816 = vmatpush3.bf16.xpose.msra.mxu1 %v779_v5 }
   0xe   :  { %784 = vmatprep.subr.bf16.mxu0 %v783_v9  ;;  %809 = vmatprep.subr.bf16.mxu1 %v783_v9 }
  0x15   :  { %786 = vmatpush3.bf16.xpose.msra.mxu0 %v783_v9  ;;  %817 = vmatpush3.bf16.xpose.msra.mxu1 %v783_v9 }
  0x16   :  { %788 = vmatprep.subr.bf16.mxu0 %v787_v12  ;;  %810 = vmatprep.subr.bf16.mxu1 %v787_v12 }
  0x1d   :  { %790 = vmatpush3.bf16.xpose.msra.mxu0 %v787_v12  ;;  %818 = vmatpush3.bf16.xpose.msra.mxu1 %v787_v12 }
  0x1e   :  { %792 = vmatprep.subr.bf16.mxu0 %v791_v14  ;;  %811 = vmatprep.subr.bf16.mxu1 %v791_v14 }
  0x25   :  { %794 = vmatpush3.bf16.xpose.msra.mxu0 %v791_v14  ;;  %819 = vmatpush3.bf16.xpose.msra.mxu1 %v791_v14 }
  0x26   :  { %796 = vmatprep.subr.bf16.mxu0 %v795_v17  ;;  %812 = vmatprep.subr.bf16.mxu1 %v795_v17 }
  0x2d   :  { %798 = vmatpush3.bf16.xpose.msra.mxu0 %v795_v17  ;;  %820 = vmatpush3.bf16.xpose.msra.mxu1 %v795_v17 }
  0x2e   :  { %800 = vmatprep.subr.bf16.mxu0 %v799_v20  ;;  %813 = vmatprep.subr.bf16.mxu1 %v799_v20 }
  0x35   :  { %802 = vmatpush3.bf16.xpose.msra.mxu0 %v799_v20  ;;  %821 = vmatpush3.bf16.xpose.msra.mxu1 %v799_v20 }
  0x36   :  { %804 = vmatprep.subr.bf16.mxu0 %v803_v23  ;;  %814 = vmatprep.subr.bf16.mxu1 %v803_v23 }
  0x3d   :  { %806 = vmatpush3.bf16.xpose.msra.mxu0 %v803_v23  ;;  %822 = vmatpush3.bf16.xpose.msra.mxu1 %v803_v23 }
  0x44   :  { %752 = vmatmul.mubr.f32.vlgmr.msra.gmra.mrb[0].mxu0 %v9_v1  ;;  %764 = vmatmul.mubr.f32.vlgmr.msra.gmra.mrb[0].mxu1 %v17_v13 }
  0x45   :  { %754 = vmatprep.mubr.f32.mxu0 %v10_v2  ;;  %766 = vmatprep.mubr.f32.mxu1 %v18_v15 }
  0x48   :  { %755 = vmatmul.mubr.f32.gmra.mrb[2].mxu0 %v11_v4  ;;  %767 = vmatmul.mubr.f32.gmra.mrb[2].mxu1 %v19_v16 }
  0x49   :  { %757 = vmatprep.mubr.f32.mxu0 %v12_v7  ;;  %769 = vmatprep.mubr.f32.mxu1 %v20_v18 }
  0x4c   :  { %758 = vmatmul.mubr.f32.gmra.mrb[4].mxu0 %v13_v8  ;;  %770 = vmatmul.mubr.f32.gmra.mrb[4].mxu1 %v21_v19 }
  0x4d   :  { %760 = vmatprep.mubr.f32.mxu0 %v14_v10  ;;  %772 = vmatprep.mubr.f32.mxu1 %v22_v21 }
  0x50   :  { %761 = vmatmul.mubr.f32.gmra.mrb[6].mxu0 %v15_v11  ;;  %773 = vmatmul.mubr.f32.gmra.mrb[6].mxu1 %v23_v22 }
 0x117   :  { %v753_v28 = vpop.f32.mrb[0].mxu0  ;;  %v765_v29 = vpop.f32.mrb[0].mxu1 }
 0x118   :  { %v188_v30 = vmul.f32 2.0, %v753_v28  ;;  %v108_v31 = vpop.f32.mrb[1].mxu0  ;;  %v148_v33 = vpop.f32.mrb[1].mxu1 }
 0x119   :  { %v187_v34 = vmul.f32 2.0, %v108_v31 }
 0x11a   :  { %v242_v35 = vmul.f32 1.442695, %v188_v30  ;;  %v417_v42 = vsel %vm401_vm1, %v188_v30, 0.0 }
 0x11b   :  { %v240_v36 = vmul.f32 1.442695, %v187_v34  ;;  %v416_v37 = vsel %vm400_vm0, %v187_v34, 0.0  ;;  %v756_v38 = vpop.f32.mrb[2].mxu0  ;;  %v768_v39 = vpop.f32.mrb[2].mxu1 }
 0x11c   :  { %432 = vadd.xlane.f32.xlu1 %v416_v37  ;;  %v118_v40 = vpop.f32.mrb[3].mxu0  ;;  %v158_v41 = vpop.f32.mrb[3].mxu1 }
 0x11d   :  { %825 = vpow2.f32 %v240_v36 }
 0x11e   :  { %827 = vpow2.f32 %v242_v35 }
 0x11f   :  { %v759_v43 = vpop.f32.mrb[4].mxu0  ;;  %v771_v44 = vpop.f32.mrb[4].mxu1 }
 0x120   :  { %434 = vadd.xlane.f32.xlu1 %v417_v42  ;;  %v128_v45 = vpop.f32.mrb[5].mxu0  ;;  %v168_v46 = vpop.f32.mrb[5].mxu1 }
 0x123   :  { %v762_v47 = vpop.f32.mrb[6].mxu0  ;;  %v774_v48 = vpop.f32.mrb[6].mxu1 }
 0x124   :  { %v138_v49 = vpop.f32.mrb[7].mxu0  ;;  %v178_v50 = vpop.f32.mrb[7].mxu1 }
 0x127   :  { %v826_v51 = vpop.eup %825 }
 0x128   :  { %v272_v52 = vsel %vm239_vm2, %v826_v51, 0.0  ;;  %v828_v53 = vpop.eup %827 }
 0x129   :  { %288 = vadd.xlane.f32.xlu0 %v272_v52  ;;  %v273_v54 = vsel %vm239_vm2, %v828_v53, 0.0 }
 0x12d   :  { %290 = vadd.xlane.f32.xlu0 %v273_v54 }
 0x1a9   :  { %v433_v55 = vpop.xlane.xlu1 %432 }
 0x1aa   :  { %v464_v56 = vmul.f32 1.442695, %v433_v55 }
 0x1ac   :  { %829 = vpow2.f32 %v464_v56 }
 0x1ad   :  { %v435_v57 = vpop.xlane.xlu1 %434 }
 0x1ae   :  { %v466_v60 = vmul.f32 1.442695, %v435_v57 }
 0x1b6   :  { %v289_v58 = vpop.xlane.xlu0 %288  ;;  %v830_v63 = vpop.eup %829 }
 0x1b7   :  { %v655_v59 = vadd.f32 -7.389056, %v289_v58 }
 0x1b9   :  { %831 = vrcp.f32 %v655_v59 }
 0x1ba   :  { %v291_v61 = vpop.xlane.xlu0 %290  ;;  %833 = vpow2.f32 %v466_v60 }
 0x1bb   :  { %v656_v62 = vadd.f32 -7.389056, %v291_v61 }
 0x1bd   :  { %835 = vrcp.f32 %v656_v62 }
 0x1c3   :  { %v832_v0 = vpop.eup %831 }
 0x1c4   :  { %v497_v1 = vmul.f32 %v832_v0, %v830_v63  ;;  %v834_v2 = vpop.eup %833 }
 0x1c6   :  { %837 = vlog2.f32 %v497_v1 }
 0x1c7   :  { %v836_v3 = vpop.eup %835 }
 0x1c8   :  { %v499_v4 = vmul.f32 %v836_v3, %v834_v2 }
 0x1ca   :  { %839 = vlog2.f32 %v499_v4 }
 0x1d0   :  { %v838_v5 = vpop.eup %837 }
 0x1d1   :  { %v529_v6 = vmul.f32 0.6931472, %v838_v5 }
 0x1d3   :  { %v560_v9 = vsub.f32 0.0, %v529_v6 }
 0x1d4   :  { %v840_v7 = vpop.eup %839 }
 0x1d5   :  { %v531_v8 = vmul.f32 0.6931472, %v840_v7  ;;  %v609_v11 = vsel %vm608_vm3, %v560_v9, 0.0 }
 0x1d7   :  { %v561_v10 = vsub.f32 0.0, %v531_v8 }
 0x1d9   :  { %v610_v12 = vsel %vm608_vm3, %v561_v10, 0.0 }
 0x1da   :  { %v611_v13 = vadd.f32 %v610_v12, %v609_v11 }
 0x1dc   :  { %640 = vadd.xlane.f32.xlu0 %v611_v13 }
 0x269   :  { %v641_v14 = vpop.xlane.xlu0 %640 }
 0x26a   :  { %v642_v15 = vrot.slane %v641_v14, 4 }
 0x26c   :  { %v643_v16 = vadd.f32 %v642_v15, %v641_v14 }
 0x26e   :  { %v644_v17 = vrot.slane %v643_v16, 2 }
 0x270   :  { %v645_v18 = vadd.f32 %v644_v17, %v643_v16 }
 0x272   :  { %v646_v19 = vrot.slane %v645_v18, 1 }
 0x274   :  { %v647_v20 = vadd.f32 %v646_v19, %v645_v18 }
 0x276   :  { %823 = vpush %v647_v20 }
 0x2a7   :  { %s824_s0 = spop %823 }
 0x2a8   :  { %v649_v21 = vstv %s824_s0 }
 0x2a9   :  { %650 = vst [vmem:[%s903_s1] sm:$0x1] %v649_v21 }

</bundles_post_ra>
